<compile_context>
chip_gen: v5e
topology: v5e:2x2
jax: 0.10.0
libtpu: 0.0.40
codegen_flags: <defaults>
</compile_context>

<pallas_src>
import jax
import jax.numpy as jnp
from jax.experimental import pallas as pl
from jax.experimental.pallas import tpu as pltpu

# fc1..fc10 dimensions from the PyTorch module __init__
LAYER_DIMS = [150, 150, 100, 100, 50, 50, 25, 25, 25, 10, 10]
NUM_LAYERS = len(LAYER_DIMS) - 1          # 10
P_WIDE = 256                              # lane width for 150-wide dims (fc1)
P = 128                                   # lane width for fc2..fc10 outputs
MAX_TB = 512                              # batch-tile cap (rows per grid step)


def mlp_kernel(x_ref, w1_ref, w2_ref, wr_ref, b1_ref, br_ref, o_ref):
    # x_ref : (TB, 256) f32      w1_ref: (256, 256) bf16    b1_ref: (1, 256) f32
    # w2_ref: (256, 128) bf16    wr_ref: (8, 128, 128) bf16
    # br_ref: (9, 1, 128) f32    o_ref : (TB, 128) f32
    h = x_ref[...]

    # fc1: 150 -> 150   (padded 256 x 256)
    h = jnp.dot(h.astype(jnp.bfloat16), w1_ref[...],
                preferred_element_type=jnp.float32)
    h = jnp.maximum(h + b1_ref[...], 0.0)

    # fc2: 150 -> 100   (padded 256 x 128)
    h = jnp.dot(h.astype(jnp.bfloat16), w2_ref[...],
                preferred_element_type=jnp.float32)
    h = jnp.maximum(h + br_ref[0], 0.0)

    # fc3..fc10: all dims <= 100   (padded 128 x 128), static unroll
    for i in range(NUM_LAYERS - 2):
        h = jnp.dot(h.astype(jnp.bfloat16), wr_ref[i],
                    preferred_element_type=jnp.float32)
        h = jnp.maximum(h + br_ref[i + 1], 0.0)

    o_ref[...] = h


@jax.jit
def deep_mlp_forward(x, w1, w2, w_rest, b1, b_rest):
    """x: (B, 150) float32 -> (B, 10) float32."""
    B, D_in = x.shape
    assert D_in == LAYER_DIMS[0]

    # Adaptive batch tile: big tiles for throughput, small pad for tiny batches.
    tb = min(MAX_TB, ((B + 7) // 8) * 8)
    b_pad = ((B + tb - 1) // tb) * tb

    # Pad batch to a tile multiple and features to 256 lanes (zero pad is exact).
    x_pad = jnp.zeros((b_pad, P_WIDE), jnp.float32).at[:B, :D_in].set(x)

    out_pad = pl.pallas_call(
        mlp_kernel,
        out_shape=jax.ShapeDtypeStruct((b_pad, P), jnp.float32),
        grid_spec=pltpu.PrefetchScalarGridSpec(
            num_scalar_prefetch=0,
            grid=(b_pad // tb,),
            in_specs=[
                pl.BlockSpec((tb, P_WIDE), lambda i: (i, 0)),              # x tile
                pl.BlockSpec((P_WIDE, P_WIDE), lambda i: (0, 0)),          # fc1 W
                pl.BlockSpec((P_WIDE, P), lambda i: (0, 0)),               # fc2 W
                pl.BlockSpec((NUM_LAYERS - 2, P, P), lambda i: (0, 0, 0)),  # fc3..10 W
                pl.BlockSpec((1, P_WIDE), lambda i: (0, 0)),               # fc1 b
                pl.BlockSpec((NUM_LAYERS - 1, 1, P), lambda i: (0, 0, 0)),  # fc2..10 b
            ],
            out_specs=pl.BlockSpec((tb, P), lambda i: (i, 0)),
        ),
        compiler_params=pltpu.CompilerParams(
            dimension_semantics=("parallel",)),
    )(x_pad, w1, w2, w_rest, b1, b_rest)

    return out_pad[:B, :LAYER_DIMS[-1]]


def init_params(key):
    """Deterministic Xavier-normal weights, zero biases (like the PyTorch init).

    Returns the unpadded f32 per-layer (W, b) lists used by the reference.
    """
    ws, bs = [], []
    for i in range(NUM_LAYERS):
        fan_in, fan_out = LAYER_DIMS[i], LAYER_DIMS[i + 1]
        key, sub = jax.random.split(key)
        std = (2.0 / (fan_in + fan_out)) ** 0.5
        ws.append(std * jax.random.normal(sub, (fan_in, fan_out), jnp.float32))
        bs.append(jnp.zeros((fan_out,), jnp.float32))   # init.zeros_
    return ws, bs


def pack_params(ws, bs):
    """Zero-pad weights into bf16 kernel stacks with mixed 256/128 lane widths."""
    w1 = (jnp.zeros((P_WIDE, P_WIDE), jnp.bfloat16)
          .at[:LAYER_DIMS[0], :LAYER_DIMS[1]].set(ws[0].astype(jnp.bfloat16)))
    b1 = jnp.zeros((1, P_WIDE), jnp.float32).at[0, :LAYER_DIMS[1]].set(bs[0])

    w2 = (jnp.zeros((P_WIDE, P), jnp.bfloat16)
          .at[:LAYER_DIMS[1], :LAYER_DIMS[2]].set(ws[1].astype(jnp.bfloat16)))

    w_rest = jnp.zeros((NUM_LAYERS - 2, P, P), jnp.bfloat16)
    b_rest = jnp.zeros((NUM_LAYERS - 1, 1, P), jnp.float32)
    b_rest = b_rest.at[0, 0, :LAYER_DIMS[2]].set(bs[1])          # fc2 bias
    for i in range(2, NUM_LAYERS):
        fi, fo = LAYER_DIMS[i], LAYER_DIMS[i + 1]
        w_rest = w_rest.at[i - 2, :fi, :fo].set(ws[i].astype(jnp.bfloat16))
        b_rest = b_rest.at[i - 1, 0, :fo].set(bs[i])
    return w1, w2, w_rest, b1, b_rest


def reference_forward(x, ws, bs):
    """Pure-JAX reference mirroring the kernel's bf16-operand / f32-accum math."""
    h = x
    for w, b in zip(ws, bs):
        h = jnp.dot(h.astype(jnp.bfloat16), w.astype(jnp.bfloat16),
                    preferred_element_type=jnp.float32) + b
        h = jnp.maximum(h, 0.0)
    return h


if __name__ == "__main__":
    key = jax.random.PRNGKey(0)
    k_x, k_x2, k_w = jax.random.split(key, 3)

    ws, bs = init_params(k_w)
    w1, w2, w_rest, b1, b_rest = pack_params(ws, bs)

    # Small-shape check (batch=2): single small grid step.
    batch = 2
    x = jax.random.normal(k_x, (batch, LAYER_DIMS[0]), jnp.float32)
    out = deep_mlp_forward(x, w1, w2, w_rest, b1, b_rest)
    out = jax.block_until_ready(out)
    ref = reference_forward(x, ws, bs)
    assert out.shape == (batch, LAYER_DIMS[-1])
    assert jnp.allclose(out, ref, atol=1e-3, rtol=1e-3)

    # Larger-batch check exercising the 512-row tile / multi-step grid path.
    batch2 = 600
    x2 = jax.random.normal(k_x2, (batch2, LAYER_DIMS[0]), jnp.float32)
    out2 = jax.block_until_ready(deep_mlp_forward(x2, w1, w2, w_rest, b1, b_rest))
    ref2 = reference_forward(x2, ws, bs)
    assert out2.shape == (batch2, LAYER_DIMS[-1])
    assert jnp.allclose(out2, ref2, atol=1e-3, rtol=1e-3)

    print("KERNEL_OK")
</pallas_src>

<mosaic_0001>
module attributes {stable_mosaic.version = 11 : i64} {
  func.func @mlp_kernel(%arg0: i32, %arg1: memref<8x256xf32, #tpu.memory_space<vmem>>, %arg2: memref<256x256xbf16, #tpu.memory_space<vmem>>, %arg3: memref<256x128xbf16, #tpu.memory_space<vmem>>, %arg4: memref<8x128x128xbf16, #tpu.memory_space<vmem>>, %arg5: memref<1x256xf32, #tpu.memory_space<vmem>>, %arg6: memref<9x1x128xf32, #tpu.memory_space<vmem>>, %arg7: memref<8x128xf32, #tpu.memory_space<vmem>>) attributes {dimension_semantics = [#tpu.dimension_semantics<parallel>], iteration_bounds = array<i64: 1>, scalar_prefetch = 0 : i64, scratch_operands = 0 : i64, tpu.core_type = #tpu.core_type<tc>, window_params = [{transform_indices = @transform_0, window_bounds = array<i64: 8, 256>}, {pipeline_mode = #tpu.pipeline_mode<synchronous>, transform_indices = @transform_1, window_bounds = array<i64: 256, 256>}, {pipeline_mode = #tpu.pipeline_mode<synchronous>, transform_indices = @transform_2, window_bounds = array<i64: 256, 128>}, {pipeline_mode = #tpu.pipeline_mode<synchronous>, transform_indices = @transform_3, window_bounds = array<i64: 8, 128, 128>}, {pipeline_mode = #tpu.pipeline_mode<synchronous>, transform_indices = @transform_4, window_bounds = array<i64: 1, 256>}, {pipeline_mode = #tpu.pipeline_mode<synchronous>, transform_indices = @transform_5, window_bounds = array<i64: 9, 1, 128>}, {transform_indices = @transform_6, window_bounds = array<i64: 8, 128>}]} {
    %c0 = arith.constant 0 : index
    %c0_0 = arith.constant 0 : index
    %0 = vector.load %arg1[%c0, %c0_0] : memref<8x256xf32, #tpu.memory_space<vmem>>, vector<8x256xf32>
    %1 = arith.truncf %0 : vector<8x256xf32> to vector<8x256xbf16>
    %c0_1 = arith.constant 0 : index
    %c0_2 = arith.constant 0 : index
    %2 = vector.load %arg2[%c0_1, %c0_2] : memref<256x256xbf16, #tpu.memory_space<vmem>>, vector<256x256xbf16>
    %cst = arith.constant dense<0.000000e+00> : vector<8x256xf32>
    %3 = tpu.matmul %1, %2, %cst {dimension_numbers = #tpu.dot_dimension_numbers<[1], [0], [0], [1], [0, 0, 1, 1], [], []>} : vector<8x256xbf16>, vector<256x256xbf16>, vector<8x256xf32> -> vector<8x256xf32>
    %c0_3 = arith.constant 0 : index
    %c0_4 = arith.constant 0 : index
    %4 = vector.load %arg5[%c0_3, %c0_4] : memref<1x256xf32, #tpu.memory_space<vmem>>, vector<1x256xf32>
    %5 = vector.broadcast %4 : vector<1x256xf32> to vector<8x256xf32>
    %6 = arith.addf %3, %5 : vector<8x256xf32>
    %cst_5 = arith.constant 0.000000e+00 : f32
    %7 = vector.broadcast %cst_5 : f32 to vector<8x256xf32>
    %8 = arith.maximumf %6, %7 : vector<8x256xf32>
    %9 = arith.truncf %8 : vector<8x256xf32> to vector<8x256xbf16>
    %c0_6 = arith.constant 0 : index
    %c0_7 = arith.constant 0 : index
    %10 = vector.load %arg3[%c0_6, %c0_7] : memref<256x128xbf16, #tpu.memory_space<vmem>>, vector<256x128xbf16>
    %cst_8 = arith.constant dense<0.000000e+00> : vector<8x128xf32>
    %11 = tpu.matmul %9, %10, %cst_8 {dimension_numbers = #tpu.dot_dimension_numbers<[1], [0], [0], [1], [0, 0, 1, 1], [], []>} : vector<8x256xbf16>, vector<256x128xbf16>, vector<8x128xf32> -> vector<8x128xf32>
    %c0_9 = arith.constant 0 : index
    %c0_10 = arith.constant 0 : index
    %c0_11 = arith.constant 0 : index
    %12 = vector.load %arg6[%c0_9, %c0_10, %c0_11] : memref<9x1x128xf32, #tpu.memory_space<vmem>>, vector<1x1x128xf32>
    %13 = vector.shape_cast %12 : vector<1x1x128xf32> to vector<1x128xf32>
    %14 = vector.broadcast %13 : vector<1x128xf32> to vector<8x128xf32>
    %15 = arith.addf %11, %14 : vector<8x128xf32>
    %cst_12 = arith.constant 0.000000e+00 : f32
    %16 = vector.broadcast %cst_12 : f32 to vector<8x128xf32>
    %17 = arith.maximumf %15, %16 : vector<8x128xf32>
    %18 = arith.truncf %17 : vector<8x128xf32> to vector<8x128xbf16>
    %c0_13 = arith.constant 0 : index
    %c0_14 = arith.constant 0 : index
    %c0_15 = arith.constant 0 : index
    %19 = vector.load %arg4[%c0_13, %c0_14, %c0_15] : memref<8x128x128xbf16, #tpu.memory_space<vmem>>, vector<1x128x128xbf16>
    %20 = vector.shape_cast %19 : vector<1x128x128xbf16> to vector<128x128xbf16>
    %cst_16 = arith.constant dense<0.000000e+00> : vector<8x128xf32>
    %21 = tpu.matmul %18, %20, %cst_16 {dimension_numbers = #tpu.dot_dimension_numbers<[1], [0], [0], [1], [0, 0, 1, 1], [], []>} : vector<8x128xbf16>, vector<128x128xbf16>, vector<8x128xf32> -> vector<8x128xf32>
    %c1 = arith.constant 1 : index
    %c0_17 = arith.constant 0 : index
    %c0_18 = arith.constant 0 : index
    %22 = vector.load %arg6[%c1, %c0_17, %c0_18] : memref<9x1x128xf32, #tpu.memory_space<vmem>>, vector<1x1x128xf32>
    %23 = vector.shape_cast %22 : vector<1x1x128xf32> to vector<1x128xf32>
    %24 = vector.broadcast %23 : vector<1x128xf32> to vector<8x128xf32>
    %25 = arith.addf %21, %24 : vector<8x128xf32>
    %cst_19 = arith.constant 0.000000e+00 : f32
    %26 = vector.broadcast %cst_19 : f32 to vector<8x128xf32>
    %27 = arith.maximumf %25, %26 : vector<8x128xf32>
    %28 = arith.truncf %27 : vector<8x128xf32> to vector<8x128xbf16>
    %c1_20 = arith.constant 1 : index
    %c0_21 = arith.constant 0 : index
    %c0_22 = arith.constant 0 : index
    %29 = vector.load %arg4[%c1_20, %c0_21, %c0_22] : memref<8x128x128xbf16, #tpu.memory_space<vmem>>, vector<1x128x128xbf16>
    %30 = vector.shape_cast %29 : vector<1x128x128xbf16> to vector<128x128xbf16>
    %cst_23 = arith.constant dense<0.000000e+00> : vector<8x128xf32>
    %31 = tpu.matmul %28, %30, %cst_23 {dimension_numbers = #tpu.dot_dimension_numbers<[1], [0], [0], [1], [0, 0, 1, 1], [], []>} : vector<8x128xbf16>, vector<128x128xbf16>, vector<8x128xf32> -> vector<8x128xf32>
    %c2 = arith.constant 2 : index
    %c0_24 = arith.constant 0 : index
    %c0_25 = arith.constant 0 : index
    %32 = vector.load %arg6[%c2, %c0_24, %c0_25] : memref<9x1x128xf32, #tpu.memory_space<vmem>>, vector<1x1x128xf32>
    %33 = vector.shape_cast %32 : vector<1x1x128xf32> to vector<1x128xf32>
    %34 = vector.broadcast %33 : vector<1x128xf32> to vector<8x128xf32>
    %35 = arith.addf %31, %34 : vector<8x128xf32>
    %cst_26 = arith.constant 0.000000e+00 : f32
    %36 = vector.broadcast %cst_26 : f32 to vector<8x128xf32>
    %37 = arith.maximumf %35, %36 : vector<8x128xf32>
    %38 = arith.truncf %37 : vector<8x128xf32> to vector<8x128xbf16>
    %c2_27 = arith.constant 2 : index
    %c0_28 = arith.constant 0 : index
    %c0_29 = arith.constant 0 : index
    %39 = vector.load %arg4[%c2_27, %c0_28, %c0_29] : memref<8x128x128xbf16, #tpu.memory_space<vmem>>, vector<1x128x128xbf16>
    %40 = vector.shape_cast %39 : vector<1x128x128xbf16> to vector<128x128xbf16>
    %cst_30 = arith.constant dense<0.000000e+00> : vector<8x128xf32>
    %41 = tpu.matmul %38, %40, %cst_30 {dimension_numbers = #tpu.dot_dimension_numbers<[1], [0], [0], [1], [0, 0, 1, 1], [], []>} : vector<8x128xbf16>, vector<128x128xbf16>, vector<8x128xf32> -> vector<8x128xf32>
    %c3 = arith.constant 3 : index
    %c0_31 = arith.constant 0 : index
    %c0_32 = arith.constant 0 : index
    %42 = vector.load %arg6[%c3, %c0_31, %c0_32] : memref<9x1x128xf32, #tpu.memory_space<vmem>>, vector<1x1x128xf32>
    %43 = vector.shape_cast %42 : vector<1x1x128xf32> to vector<1x128xf32>
    %44 = vector.broadcast %43 : vector<1x128xf32> to vector<8x128xf32>
    %45 = arith.addf %41, %44 : vector<8x128xf32>
    %cst_33 = arith.constant 0.000000e+00 : f32
    %46 = vector.broadcast %cst_33 : f32 to vector<8x128xf32>
    %47 = arith.maximumf %45, %46 : vector<8x128xf32>
    %48 = arith.truncf %47 : vector<8x128xf32> to vector<8x128xbf16>
    %c3_34 = arith.constant 3 : index
    %c0_35 = arith.constant 0 : index
    %c0_36 = arith.constant 0 : index
    %49 = vector.load %arg4[%c3_34, %c0_35, %c0_36] : memref<8x128x128xbf16, #tpu.memory_space<vmem>>, vector<1x128x128xbf16>
    %50 = vector.shape_cast %49 : vector<1x128x128xbf16> to vector<128x128xbf16>
    %cst_37 = arith.constant dense<0.000000e+00> : vector<8x128xf32>
    %51 = tpu.matmul %48, %50, %cst_37 {dimension_numbers = #tpu.dot_dimension_numbers<[1], [0], [0], [1], [0, 0, 1, 1], [], []>} : vector<8x128xbf16>, vector<128x128xbf16>, vector<8x128xf32> -> vector<8x128xf32>
    %c4 = arith.constant 4 : index
    %c0_38 = arith.constant 0 : index
    %c0_39 = arith.constant 0 : index
    %52 = vector.load %arg6[%c4, %c0_38, %c0_39] : memref<9x1x128xf32, #tpu.memory_space<vmem>>, vector<1x1x128xf32>
    %53 = vector.shape_cast %52 : vector<1x1x128xf32> to vector<1x128xf32>
    %54 = vector.broadcast %53 : vector<1x128xf32> to vector<8x128xf32>
    %55 = arith.addf %51, %54 : vector<8x128xf32>
    %cst_40 = arith.constant 0.000000e+00 : f32
    %56 = vector.broadcast %cst_40 : f32 to vector<8x128xf32>
    %57 = arith.maximumf %55, %56 : vector<8x128xf32>
    %58 = arith.truncf %57 : vector<8x128xf32> to vector<8x128xbf16>
    %c4_41 = arith.constant 4 : index
    %c0_42 = arith.constant 0 : index
    %c0_43 = arith.constant 0 : index
    %59 = vector.load %arg4[%c4_41, %c0_42, %c0_43] : memref<8x128x128xbf16, #tpu.memory_space<vmem>>, vector<1x128x128xbf16>
    %60 = vector.shape_cast %59 : vector<1x128x128xbf16> to vector<128x128xbf16>
    %cst_44 = arith.constant dense<0.000000e+00> : vector<8x128xf32>
    %61 = tpu.matmul %58, %60, %cst_44 {dimension_numbers = #tpu.dot_dimension_numbers<[1], [0], [0], [1], [0, 0, 1, 1], [], []>} : vector<8x128xbf16>, vector<128x128xbf16>, vector<8x128xf32> -> vector<8x128xf32>
    %c5 = arith.constant 5 : index
    %c0_45 = arith.constant 0 : index
    %c0_46 = arith.constant 0 : index
    %62 = vector.load %arg6[%c5, %c0_45, %c0_46] : memref<9x1x128xf32, #tpu.memory_space<vmem>>, vector<1x1x128xf32>
    %63 = vector.shape_cast %62 : vector<1x1x128xf32> to vector<1x128xf32>
    %64 = vector.broadcast %63 : vector<1x128xf32> to vector<8x128xf32>
    %65 = arith.addf %61, %64 : vector<8x128xf32>
    %cst_47 = arith.constant 0.000000e+00 : f32
    %66 = vector.broadcast %cst_47 : f32 to vector<8x128xf32>
    %67 = arith.maximumf %65, %66 : vector<8x128xf32>
    %68 = arith.truncf %67 : vector<8x128xf32> to vector<8x128xbf16>
    %c5_48 = arith.constant 5 : index
    %c0_49 = arith.constant 0 : index
    %c0_50 = arith.constant 0 : index
    %69 = vector.load %arg4[%c5_48, %c0_49, %c0_50] : memref<8x128x128xbf16, #tpu.memory_space<vmem>>, vector<1x128x128xbf16>
    %70 = vector.shape_cast %69 : vector<1x128x128xbf16> to vector<128x128xbf16>
    %cst_51 = arith.constant dense<0.000000e+00> : vector<8x128xf32>
    %71 = tpu.matmul %68, %70, %cst_51 {dimension_numbers = #tpu.dot_dimension_numbers<[1], [0], [0], [1], [0, 0, 1, 1], [], []>} : vector<8x128xbf16>, vector<128x128xbf16>, vector<8x128xf32> -> vector<8x128xf32>
    %c6 = arith.constant 6 : index
    %c0_52 = arith.constant 0 : index
    %c0_53 = arith.constant 0 : index
    %72 = vector.load %arg6[%c6, %c0_52, %c0_53] : memref<9x1x128xf32, #tpu.memory_space<vmem>>, vector<1x1x128xf32>
    %73 = vector.shape_cast %72 : vector<1x1x128xf32> to vector<1x128xf32>
    %74 = vector.broadcast %73 : vector<1x128xf32> to vector<8x128xf32>
    %75 = arith.addf %71, %74 : vector<8x128xf32>
    %cst_54 = arith.constant 0.000000e+00 : f32
    %76 = vector.broadcast %cst_54 : f32 to vector<8x128xf32>
    %77 = arith.maximumf %75, %76 : vector<8x128xf32>
    %78 = arith.truncf %77 : vector<8x128xf32> to vector<8x128xbf16>
    %c6_55 = arith.constant 6 : index
    %c0_56 = arith.constant 0 : index
    %c0_57 = arith.constant 0 : index
    %79 = vector.load %arg4[%c6_55, %c0_56, %c0_57] : memref<8x128x128xbf16, #tpu.memory_space<vmem>>, vector<1x128x128xbf16>
    %80 = vector.shape_cast %79 : vector<1x128x128xbf16> to vector<128x128xbf16>
    %cst_58 = arith.constant dense<0.000000e+00> : vector<8x128xf32>
    %81 = tpu.matmul %78, %80, %cst_58 {dimension_numbers = #tpu.dot_dimension_numbers<[1], [0], [0], [1], [0, 0, 1, 1], [], []>} : vector<8x128xbf16>, vector<128x128xbf16>, vector<8x128xf32> -> vector<8x128xf32>
    %c7 = arith.constant 7 : index
    %c0_59 = arith.constant 0 : index
    %c0_60 = arith.constant 0 : index
    %82 = vector.load %arg6[%c7, %c0_59, %c0_60] : memref<9x1x128xf32, #tpu.memory_space<vmem>>, vector<1x1x128xf32>
    %83 = vector.shape_cast %82 : vector<1x1x128xf32> to vector<1x128xf32>
    %84 = vector.broadcast %83 : vector<1x128xf32> to vector<8x128xf32>
    %85 = arith.addf %81, %84 : vector<8x128xf32>
    %cst_61 = arith.constant 0.000000e+00 : f32
    %86 = vector.broadcast %cst_61 : f32 to vector<8x128xf32>
    %87 = arith.maximumf %85, %86 : vector<8x128xf32>
    %88 = arith.truncf %87 : vector<8x128xf32> to vector<8x128xbf16>
    %c7_62 = arith.constant 7 : index
    %c0_63 = arith.constant 0 : index
    %c0_64 = arith.constant 0 : index
    %89 = vector.load %arg4[%c7_62, %c0_63, %c0_64] : memref<8x128x128xbf16, #tpu.memory_space<vmem>>, vector<1x128x128xbf16>
    %90 = vector.shape_cast %89 : vector<1x128x128xbf16> to vector<128x128xbf16>
    %cst_65 = arith.constant dense<0.000000e+00> : vector<8x128xf32>
    %91 = tpu.matmul %88, %90, %cst_65 {dimension_numbers = #tpu.dot_dimension_numbers<[1], [0], [0], [1], [0, 0, 1, 1], [], []>} : vector<8x128xbf16>, vector<128x128xbf16>, vector<8x128xf32> -> vector<8x128xf32>
    %c8 = arith.constant 8 : index
    %c0_66 = arith.constant 0 : index
    %c0_67 = arith.constant 0 : index
    %92 = vector.load %arg6[%c8, %c0_66, %c0_67] : memref<9x1x128xf32, #tpu.memory_space<vmem>>, vector<1x1x128xf32>
    %93 = vector.shape_cast %92 : vector<1x1x128xf32> to vector<1x128xf32>
    %94 = vector.broadcast %93 : vector<1x128xf32> to vector<8x128xf32>
    %95 = arith.addf %91, %94 : vector<8x128xf32>
    %cst_68 = arith.constant 0.000000e+00 : f32
    %96 = vector.broadcast %cst_68 : f32 to vector<8x128xf32>
    %97 = arith.maximumf %95, %96 : vector<8x128xf32>
    %c0_69 = arith.constant 0 : index
    %c0_70 = arith.constant 0 : index
    %98 = vector.load %arg7[%c0_69, %c0_70] : memref<8x128xf32, #tpu.memory_space<vmem>>, vector<8x128xf32>
    tpu.vector_store %arg7[%c0_69, %c0_70], %97 {strides = array<i32>} : memref<8x128xf32, #tpu.memory_space<vmem>>, vector<8x128xf32>,
    return
  }
  func.func @transform_0(%arg0: i32) -> (i32, i32) {
    %c0_i32 = arith.constant 0 : i32
    %c0_i32_0 = arith.constant 0 : i32
    return %arg0, %c0_i32 : i32, i32
  }
  func.func @transform_1(%arg0: i32) -> (i32, i32) {
    %c0_i32 = arith.constant 0 : i32
    %c0_i32_0 = arith.constant 0 : i32
    %c0_i32_1 = arith.constant 0 : i32
    return %c0_i32, %c0_i32_0 : i32, i32
  }
  func.func @transform_2(%arg0: i32) -> (i32, i32) {
    %c0_i32 = arith.constant 0 : i32
    %c0_i32_0 = arith.constant 0 : i32
    %c0_i32_1 = arith.constant 0 : i32
    return %c0_i32, %c0_i32_0 : i32, i32
  }
  func.func @transform_3(%arg0: i32) -> (i32, i32, i32) {
    %c0_i32 = arith.constant 0 : i32
    %c0_i32_0 = arith.constant 0 : i32
    %c0_i32_1 = arith.constant 0 : i32
    %c0_i32_2 = arith.constant 0 : i32
    return %c0_i32, %c0_i32_0, %c0_i32_1 : i32, i32, i32
  }
  func.func @transform_4(%arg0: i32) -> (i32, i32) {
    %c0_i32 = arith.constant 0 : i32
    %c0_i32_0 = arith.constant 0 : i32
    %c0_i32_1 = arith.constant 0 : i32
    return %c0_i32, %c0_i32_0 : i32, i32
  }
  func.func @transform_5(%arg0: i32) -> (i32, i32, i32) {
    %c0_i32 = arith.constant 0 : i32
    %c0_i32_0 = arith.constant 0 : i32
    %c0_i32_1 = arith.constant 0 : i32
    %c0_i32_2 = arith.constant 0 : i32
    return %c0_i32, %c0_i32_0, %c0_i32_1 : i32, i32, i32
  }
  func.func @transform_6(%arg0: i32) -> (i32, i32) {
    %c0_i32 = arith.constant 0 : i32
    %c0_i32_0 = arith.constant 0 : i32
    return %arg0, %c0_i32 : i32, i32
  }
}

</mosaic_0001>

<bundles_post_ra>
// kernel: deep_mlp_forward.1
= control target key start
LH: loop header
LB: loop body
LE: loop exit
PB: predicated region body
PF: predicated region fallthrough
CT: control target
= control target key end

     0   :  { %11 = vsyncpa [#allocation3], 0  ;;  %s1923_s0 = inlined_call_operand.vmem [shape: f32[8,256], index: 0, kind: input, shape index: {}]   ;;  %s1924_s1 = inlined_call_operand.hbm [shape: bf16[256,256], index: 1, kind: input, shape index: {}]   ;;  %s1925_s2 = inlined_call_operand.hbm [shape: bf16[256,128], index: 2, kind: input, shape index: {}]   ;;  %s1926_s3 = inlined_call_operand.hbm [shape: bf16[8,128,128], index: 3, kind: input, shape index: {}]   ;;  %s1927_s4 = inlined_call_operand.vmem [shape: f32[1,256], index: 4, kind: input, shape index: {}]   ;;  %s1928_s5 = inlined_call_operand.vmem [shape: f32[9,1,128], index: 5, kind: input, shape index: {}]   ;;  %s1929_s6 = inlined_call_operand.vmem [shape: f32[8,128], index: 6, kind: output, shape index: {}]  }
   0x1   :  { %12 = vsyncpa [#allocation5], 0  ;;  %s32_s23 = sshll.u32 %s1925_s2, 4  ;;  %s1833_s24 = smov [#allocation4]   ;;  %s33_s23 = int_to_ptr.hbm [resolvable:$true] %s32_s23 }
   0x2   :  { %s34_s25 = sshll.u32 %s1833_s24, 4  ;;  %s19_s28 = sshll.u32 %s1924_s1, 4  ;;  %s35_s25 = int_to_ptr.vmem [resolvable:$true] %s34_s25  ;;  %s20_s28 = int_to_ptr.hbm [resolvable:$true] %s19_s28 }
   0x3   :  { %s1834_s29 = smov 64   ;;  %s1835_s30 = smov 4  }
   0x4   :  { %40 = dma.hbm_to_vmem [thread:$0]  %s33_s23, 2048, %s35_s25, [#allocation5], %s1834_s29, %s1834_s29, %s1835_s30  }
   0x5   :  { %s1836_s7 = smov [#allocation2]   ;;  %s1837_s9 = smov 128  }
   0x6   :  { %s21_s8 = sshll.u32 %s1836_s7, 4  ;;  %s1838_s10 = smov 8   ;;  %s22_s8 = int_to_ptr.vmem [resolvable:$true] %s21_s8 }
   0x7   :  { %27 = dma.hbm_to_vmem [thread:$0]  %s20_s28, 4096, %s22_s8, [#allocation3], %s1837_s9, %s1837_s9, %s1838_s10  }
   0x8   :  { %s45_s12 = sshll.u32 %s1926_s3, 4  ;;  %s1839_s13 = smov [#allocation6]   ;;  %s46_s12 = int_to_ptr.hbm [resolvable:$true] %s45_s12 }
   0x9   :  { %s47_s14 = sshll.u32 %s1839_s13, 4  ;;  %s48_s14 = int_to_ptr.vmem [resolvable:$true] %s47_s14 }
   0xa   :  { %53 = dma.hbm_to_vmem [thread:$0]  %s46_s12, 8192, %s48_s14, [#allocation5], %s1834_s29, %s1834_s29, %s1835_s30  }
   0xb   :  { %1829 = dma.done.wait [#allocation3], 4096  }
   0xc   :  { %1830 = vsyncadd [#allocation3], 4294963200 }
   0xd   :  { %1831 = dma.done.wait [#allocation5], 10240  }
   0xe   :  { %1832 = vsyncadd [#allocation5], 4294957056  ;;  %v1231_v0 = vld [vmem:[#allocation2 + $0x70] sm:$0xf]  ;;  %v1644_v1 = vld [vmem:[#allocation2 + $0x74] sm:$0xf0] }
   0xf   :  { %v1295_v2 = vld [vmem:[#allocation2 + $0xf0] sm:$0xf]  ;;  %v1232_v3 = vor.u32 %v1644_v1, %v1231_v0  ;;  %v1660_v4 = vld [vmem:[#allocation2 + $0xf4] sm:$0xf0]  ;;  %v1643_v5 = vld [vmem:[#allocation2 + $0x74] sm:$0xf] }
  0x10   :  { %v1233_v6 = vld [vmem:[#allocation2 + $0x78] sm:$0xf0]  ;;  %v1296_v7 = vor.u32 %v1660_v4, %v1295_v2  ;;  %v1659_v9 = vld [vmem:[#allocation2 + $0xf4] sm:$0xf]  ;;  %v1223_v11 = vld [vmem:[#allocation2 + $0x60] sm:$0xf] }
  0x11   :  { %v1236_v8 = vor.u32 %v1643_v5, %v1233_v6  ;;  %v1297_v10 = vld [vmem:[#allocation2 + $0xf8] sm:$0xf0]  ;;  %272 = vmatpush.bf16.msra.mxu0 %v1232_v3  ;;  %v1642_v13 = vld [vmem:[#allocation2 + $0x64] sm:$0xf0]  ;;  %v1287_v14 = vld [vmem:[#allocation2 + $0xe0] sm:$0xf] }
  0x12   :  { %v1300_v12 = vor.u32 %v1659_v9, %v1297_v10  ;;  %v1658_v15 = vld [vmem:[#allocation2 + $0xe4] sm:$0xf0]  ;;  %285 = vmatpush.bf16.msra.mxu1 %v1296_v7  ;;  %v1224_v16 = vor.u32 %v1642_v13, %v1223_v11  ;;  %v1641_v18 = vld [vmem:[#allocation2 + $0x64] sm:$0xf]  ;;  %v1225_v19 = vld [vmem:[#allocation2 + $0x68] sm:$0xf0] }
  0x13   :  { %298 = vmatpush.bf16.msra.mxu2 %v1236_v8  ;;  %v1288_v17 = vor.u32 %v1658_v15, %v1287_v14  ;;  %v1657_v20 = vld [vmem:[#allocation2 + $0xe4] sm:$0xf]  ;;  %v1228_v21 = vor.u32 %v1641_v18, %v1225_v19  ;;  %v1289_v22 = vld [vmem:[#allocation2 + $0xe8] sm:$0xf0]  ;;  %v1215_v23 = vld [vmem:[#allocation2 + $0x50] sm:$0xf] }
  0x14   :  { %311 = vmatpush.bf16.msra.mxu3 %v1300_v12  ;;  %v1640_v24 = vld [vmem:[#allocation2 + $0x54] sm:$0xf0]  ;;  %v1292_v25 = vor.u32 %v1657_v20, %v1289_v22  ;;  %v1279_v26 = vld [vmem:[#allocation2 + $0xd0] sm:$0xf]  ;;  %v1639_v28 = vld [vmem:[#allocation2 + $0x54] sm:$0xf] }
  0x15   :  { %v1656_v27 = vld [vmem:[#allocation2 + $0xd4] sm:$0xf0]  ;;  %273 = vmatpush.bf16.msra.mxu0 %v1224_v16  ;;  %v1216_v29 = vor.u32 %v1640_v24, %v1215_v23  ;;  %v1217_v30 = vld [vmem:[#allocation2 + $0x58] sm:$0xf0]  ;;  %v1655_v31 = vld [vmem:[#allocation2 + $0xd4] sm:$0xf] }
  0x16   :  { %v1281_v32 = vld [vmem:[#allocation2 + $0xd8] sm:$0xf0]  ;;  %286 = vmatpush.bf16.msra.mxu1 %v1288_v17  ;;  %v1280_v33 = vor.u32 %v1656_v27, %v1279_v26  ;;  %v1220_v34 = vor.u32 %v1639_v28, %v1217_v30  ;;  %v1207_v35 = vld [vmem:[#allocation2 + $0x40] sm:$0xf]  ;;  %v1638_v36 = vld [vmem:[#allocation2 + $0x44] sm:$0xf0] }
  0x17   :  { %299 = vmatpush.bf16.msra.mxu2 %v1228_v21  ;;  %v1271_v37 = vld [vmem:[#allocation2 + $0xc0] sm:$0xf]  ;;  %v1284_v38 = vor.u32 %v1655_v31, %v1281_v32  ;;  %v1654_v39 = vld [vmem:[#allocation2 + $0xc4] sm:$0xf0]  ;;  %v1637_v40 = vld [vmem:[#allocation2 + $0x44] sm:$0xf]  ;;  %v1208_v44 = vor.u32 %v1638_v36, %v1207_v35 }
  0x18   :  { %312 = vmatpush.bf16.msra.mxu3 %v1292_v25  ;;  %v1209_v41 = vld [vmem:[#allocation2 + $0x48] sm:$0xf0]  ;;  %v1653_v42 = vld [vmem:[#allocation2 + $0xc4] sm:$0xf]  ;;  %v1272_v45 = vor.u32 %v1654_v39, %v1271_v37  ;;  %v1199_v47 = vld [vmem:[#allocation2 + $0x30] sm:$0xf] }
  0x19   :  { %v1273_v43 = vld [vmem:[#allocation2 + $0xc8] sm:$0xf0]  ;;  %274 = vmatpush.bf16.msra.mxu0 %v1216_v29  ;;  %v1212_v46 = vor.u32 %v1637_v40, %v1209_v41  ;;  %v1636_v48 = vld [vmem:[#allocation2 + $0x34] sm:$0xf0]  ;;  %v1263_v49 = vld [vmem:[#allocation2 + $0xb0] sm:$0xf] }
  0x1a   :  { %287 = vmatpush.bf16.msra.mxu1 %v1280_v33  ;;  %v1276_v50 = vor.u32 %v1653_v42, %v1273_v43  ;;  %v1652_v51 = vld [vmem:[#allocation2 + $0xb4] sm:$0xf0]  ;;  %v1635_v52 = vld [vmem:[#allocation2 + $0x34] sm:$0xf]  ;;  %v1201_v53 = vld [vmem:[#allocation2 + $0x38] sm:$0xf0]  ;;  %v1200_v56 = vor.u32 %v1636_v48, %v1199_v47 }
  0x1b   :  { %300 = vmatpush.bf16.msra.mxu2 %v1220_v34  ;;  %v1651_v54 = vld [vmem:[#allocation2 + $0xb4] sm:$0xf]  ;;  %v1265_v55 = vld [vmem:[#allocation2 + $0xb8] sm:$0xf0]  ;;  %v1264_v57 = vor.u32 %v1652_v51, %v1263_v49  ;;  %v1204_v58 = vor.u32 %v1635_v52, %v1201_v53  ;;  %v1191_v59 = vld [vmem:[#allocation2 + $0x20] sm:$0xf] }
  0x1c   :  { %313 = vmatpush.bf16.msra.mxu3 %v1284_v38  ;;  %v1634_v60 = vld [vmem:[#allocation2 + $0x24] sm:$0xf0]  ;;  %v1255_v61 = vld [vmem:[#allocation2 + $0xa0] sm:$0xf]  ;;  %v1268_v62 = vor.u32 %v1651_v54, %v1265_v55  ;;  %v1633_v0 = vld [vmem:[#allocation2 + $0x24] sm:$0xf] }
  0x1d   :  { %275 = vmatpush.bf16.msra.mxu0 %v1208_v44  ;;  %v1650_v63 = vld [vmem:[#allocation2 + $0xa4] sm:$0xf0]  ;;  %v1193_v1 = vld [vmem:[#allocation2 + $0x28] sm:$0xf0]  ;;  %v1649_v2 = vld [vmem:[#allocation2 + $0xa4] sm:$0xf]  ;;  %v1192_v4 = vor.u32 %v1634_v60, %v1191_v59 }
  0x1e   :  { %288 = vmatpush.bf16.msra.mxu1 %v1272_v45  ;;  %v1257_v3 = vld [vmem:[#allocation2 + $0xa8] sm:$0xf0]  ;;  %v1256_v5 = vor.u32 %v1650_v63, %v1255_v61  ;;  %v1196_v6 = vor.u32 %v1633_v0, %v1193_v1  ;;  %v1183_v7 = vld [vmem:[#allocation2 + $0x10] sm:$0xf]  ;;  %v1632_v8 = vld [vmem:[#allocation2 + $0x14] sm:$0xf0] }
  0x1f   :  { %301 = vmatpush.bf16.msra.mxu2 %v1212_v46  ;;  %v1247_v9 = vld [vmem:[#allocation2 + $0x90] sm:$0xf]  ;;  %v1260_v10 = vor.u32 %v1649_v2, %v1257_v3  ;;  %v1648_v11 = vld [vmem:[#allocation2 + $0x94] sm:$0xf0]  ;;  %v1631_v12 = vld [vmem:[#allocation2 + $0x14] sm:$0xf]  ;;  %v1184_v17 = vor.u32 %v1632_v8, %v1183_v7 }
  0x20   :  { %314 = vmatpush.bf16.msra.mxu3 %v1276_v50  ;;  %v1185_v13 = vld [vmem:[#allocation2 + $0x18] sm:$0xf0]  ;;  %v1647_v14 = vld [vmem:[#allocation2 + $0x94] sm:$0xf]  ;;  %v1175_v16 = vld [vmem:[#allocation2] sm:$0xf]  ;;  %v1248_v21 = vor.u32 %v1648_v11, %v1247_v9 }
  0x21   :  { %276 = vmatpush.bf16.msra.mxu0 %v1200_v56  ;;  %v1249_v15 = vld [vmem:[#allocation2 + $0x98] sm:$0xf0]  ;;  %v1630_v18 = vld [vmem:[#allocation2 + $0x4] sm:$0xf0]  ;;  %v1239_v19 = vld [vmem:[#allocation2 + $0x80] sm:$0xf]  ;;  %v1188_v22 = vor.u32 %v1631_v12, %v1185_v13 }
  0x22   :  { %289 = vmatpush.bf16.msra.mxu1 %v1264_v57  ;;  %v1646_v20 = vld [vmem:[#allocation2 + $0x84] sm:$0xf0]  ;;  %v1629_v23 = vld [vmem:[#allocation2 + $0x4] sm:$0xf]  ;;  %v1177_v24 = vld [vmem:[#allocation2 + $0x8] sm:$0xf0]  ;;  %v1252_v26 = vor.u32 %v1647_v14, %v1249_v15  ;;  %v1176_v30 = vor.u32 %v1630_v18, %v1175_v16 }
  0x23   :  { %302 = vmatpush.bf16.msra.mxu2 %v1204_v58  ;;  %v1645_v25 = vld [vmem:[#allocation2 + $0x84] sm:$0xf]  ;;  %v1241_v27 = vld [vmem:[#allocation2 + $0x88] sm:$0xf0]  ;;  %v1240_v31 = vor.u32 %v1646_v20, %v1239_v19  ;;  %v1180_v32 = vor.u32 %v1629_v23, %v1177_v24  ;;  %v1668_v34 = vld [vmem:[#allocation4 + $0x38] sm:$0xff] }
  0x24   :  { %315 = vmatpush.bf16.msra.mxu3 %v1268_v62  ;;  %v70_v28 = vld [vmem:[%s1923_s0] sm:$0xff]  ;;  %v71_v29 = vld [vmem:[%s1923_s0 + $0x8] sm:$0xff]  ;;  %v1244_v33 = vor.u32 %v1645_v25, %v1241_v27  ;;  %v1676_v36 = vld [vmem:[#allocation4 + $0x78] sm:$0xff] }
  0x25   :  { %277 = vmatpush.bf16.msra.mxu0 %v1192_v4  ;;  %v72_v35 = vpack.c.bf16 %v70_v28, %v70_v28  ;;  %v73_v37 = vpack.c.bf16 %v71_v29, %v71_v29  ;;  %v1667_v38 = vld [vmem:[#allocation4 + $0x30] sm:$0xff]  ;;  %v1666_v40 = vld [vmem:[#allocation4 + $0x28] sm:$0xff]  ;;  %v1665_v42 = vld [vmem:[#allocation4 + $0x20] sm:$0xff] }
  0x26   :  { %290 = vmatpush.bf16.msra.mxu1 %v1256_v5  ;;  %v1675_v39 = vld [vmem:[#allocation4 + $0x70] sm:$0xff]  ;;  %v1674_v41 = vld [vmem:[#allocation4 + $0x68] sm:$0xff]  ;;  %v1673_v43 = vld [vmem:[#allocation4 + $0x60] sm:$0xff] }
  0x27   :  { %303 = vmatpush.bf16.msra.mxu2 %v1196_v6  ;;  %v1664_v44 = vld [vmem:[#allocation4 + $0x18] sm:$0xff]  ;;  %v1663_v45 = vld [vmem:[#allocation4 + $0x10] sm:$0xff]  ;;  %v1662_v47 = vld [vmem:[#allocation4 + $0x8] sm:$0xff] }
  0x28   :  { %316 = vmatpush.bf16.msra.mxu3 %v1260_v10  ;;  %v1672_v46 = vld [vmem:[#allocation4 + $0x58] sm:$0xff]  ;;  %v1671_v48 = vld [vmem:[#allocation4 + $0x50] sm:$0xff]  ;;  %v1661_v49 = vld [vmem:[#allocation4] sm:$0xff] }
  0x29   :  { %278 = vmatpush.bf16.msra.mxu0 %v1184_v17  ;;  %v1670_v50 = vld [vmem:[#allocation4 + $0x48] sm:$0xff]  ;;  %v1669_v51 = vld [vmem:[#allocation4 + $0x40] sm:$0xff]  ;;  %v1684_v52 = vld [vmem:[#allocation6 + $0x38] sm:$0xff] }
  0x2a   :  { %291 = vmatpush.bf16.msra.mxu1 %v1248_v21  ;;  %v1683_v53 = vld [vmem:[#allocation6 + $0x30] sm:$0xff]  ;;  %v1682_v54 = vld [vmem:[#allocation6 + $0x28] sm:$0xff]  ;;  %v106_v55 = vld [vmem:[%s1927_s4] sm:$0x3] }
  0x2b   :  { %304 = vmatpush.bf16.msra.mxu2 %v1188_v22  ;;  %v1681_v56 = vld [vmem:[#allocation6 + $0x20] sm:$0xff]  ;;  %v108_v57 = vperm.slane %v106_v55, 0  ;;  %v1680_v58 = vld [vmem:[#allocation6 + $0x18] sm:$0xff]  ;;  %v109_v63 = vperm.slane %v106_v55, 1  ;;  %v1679_v12 = vld [vmem:[#allocation6 + $0x10] sm:$0xff] }
  0x2c   :  { %317 = vmatpush.bf16.msra.mxu3 %v1252_v26  ;;  %v1678_v13 = vld [vmem:[#allocation6 + $0x8] sm:$0xff]  ;;  %v1677_v14 = vld [vmem:[#allocation6] sm:$0xff]  ;;  %v1692_v15 = vld [vmem:[#allocation6 + $0x78] sm:$0xff] }
  0x2d   :  { %279 = vmatpush.bf16.msra.mxu0 %v1176_v30  ;;  %v1691_v16 = vld [vmem:[#allocation6 + $0x70] sm:$0xff]  ;;  %v1690_v17 = vld [vmem:[#allocation6 + $0x68] sm:$0xff]  ;;  %v1689_v18 = vld [vmem:[#allocation6 + $0x60] sm:$0xff] }
  0x2e   :  { %292 = vmatpush.bf16.msra.mxu1 %v1240_v31  ;;  %v1688_v19 = vld [vmem:[#allocation6 + $0x58] sm:$0xff]  ;;  %v1748_v20 = vld [vmem:[%s1928_s5] ss:$0 sm:$0xff]  ;;  %v1687_v22 = vld [vmem:[#allocation6 + $0x50] sm:$0xff] }
  0x2f   :  { %305 = vmatpush.bf16.msra.mxu2 %v1180_v32  ;;  %v1686_v30 = vld [vmem:[#allocation6 + $0x48] sm:$0xff]  ;;  %v1685_v31 = vld [vmem:[#allocation6 + $0x40] sm:$0xff]  ;;  %v1700_v32 = vld [vmem:[#allocation6 + $0xb8] sm:$0xff] }
  0x30   :  { %318 = vmatpush.bf16.msra.mxu3 %v1244_v33  ;;  %280 = vmatmul.bf16.vlgmr.msra.gmra.mxu0 %v72_v35  ;;  %v1699_v33 = vld [vmem:[#allocation6 + $0xb0] sm:$0xff] }
  0x31   :  { %460 = vmatpush.bf16.msrb.mxu0 %v1668_v34  ;;  %293 = vmatmul.bf16.vlgmr.msra.gmra.mxu1 %v73_v37  ;;  %v1698_v34 = vld [vmem:[#allocation6 + $0xa8] sm:$0xff] }
  0x32   :  { %473 = vmatpush.bf16.msrb.mxu1 %v1676_v36  ;;  %306 = vmatmul.bf16.vlgmr.msra.gmra.mxu2 %v72_v35  ;;  %v1697_v35 = vld [vmem:[#allocation6 + $0xa0] sm:$0xff]  ;;  %v1696_v36 = vld [vmem:[#allocation6 + $0x98] sm:$0xff] }
  0x33   :  { %319 = vmatmul.bf16.vlgmr.msra.gmra.mxu3 %v73_v37  ;;  %557 = vmatpush.bf16.msrb.mxu2 %v1684_v52  ;;  %v1695_v37 = vld [vmem:[#allocation6 + $0x90] sm:$0xff]  ;;  %v1750_v52 = vld [vmem:[%s1928_s5 + $0x2] ss:$0 sm:$0xff] }
  0x34   :  { %642 = vmatpush.bf16.msrb.mxu3 %v1692_v15  ;;  %v1719_v15 = vld [vmem:[#allocation6 + $0x150] sm:$0xff] }
  0x35   :  { %461 = vmatpush.bf16.msrb.mxu0 %v1667_v38  ;;  %v1749_v38 = vld [vmem:[%s1928_s5 + $0x1] ss:$0 sm:$0xff] }
  0x36   :  { %474 = vmatpush.bf16.msrb.mxu1 %v1675_v39 }
  0x37   :  { %558 = vmatpush.bf16.msrb.mxu2 %v1683_v53 }
  0x38   :  { %643 = vmatpush.bf16.msrb.mxu3 %v1691_v16  ;;  %v1752_v16 = vld [vmem:[%s1928_s5 + $0x4] ss:$0 sm:$0xff] }
  0x39   :  { %462 = vmatpush.bf16.msrb.mxu0 %v1666_v40 }
  0x3a   :  { %475 = vmatpush.bf16.msrb.mxu1 %v1674_v41 }
  0x3b   :  { %559 = vmatpush.bf16.msrb.mxu2 %v1682_v54 }
  0x3c   :  { %644 = vmatpush.bf16.msrb.mxu3 %v1690_v17 }
  0x3d   :  { %463 = vmatpush.bf16.msrb.mxu0 %v1665_v42 }
  0x3e   :  { %476 = vmatpush.bf16.msrb.mxu1 %v1673_v43 }
  0x3f   :  { %560 = vmatpush.bf16.msrb.mxu2 %v1681_v56 }
  0x40   :  { %645 = vmatpush.bf16.msrb.mxu3 %v1689_v18 }
  0x41   :  { %464 = vmatpush.bf16.msrb.mxu0 %v1664_v44  ;;  %v1694_v44 = vld [vmem:[#allocation6 + $0x88] sm:$0xff] }
  0x42   :  { %477 = vmatpush.bf16.msrb.mxu1 %v1672_v46  ;;  %v1708_v46 = vld [vmem:[#allocation6 + $0xf8] sm:$0xff] }
  0x43   :  { %561 = vmatpush.bf16.msrb.mxu2 %v1680_v58  ;;  %v1702_v58 = vld [vmem:[#allocation6 + $0xc8] sm:$0xff] }
  0x44   :  { %646 = vmatpush.bf16.msrb.mxu3 %v1688_v19 }
  0x45   :  { %465 = vmatpush.bf16.msrb.mxu0 %v1663_v45  ;;  %v1693_v45 = vld [vmem:[#allocation6 + $0x80] sm:$0xff] }
  0x46   :  { %478 = vmatpush.bf16.msrb.mxu1 %v1671_v48  ;;  %v1706_v48 = vld [vmem:[#allocation6 + $0xe8] sm:$0xff] }
  0x47   :  { %562 = vmatpush.bf16.msrb.mxu2 %v1679_v12  ;;  %v1722_v12 = vld [vmem:[#allocation6 + $0x168] sm:$0xff] }
  0x48   :  { %647 = vmatpush.bf16.msrb.mxu3 %v1687_v22  ;;  %v1718_v22 = vld [vmem:[#allocation6 + $0x148] sm:$0xff] }
  0x49   :  { %466 = vmatpush.bf16.msrb.mxu0 %v1662_v47  ;;  %v1707_v47 = vld [vmem:[#allocation6 + $0xf0] sm:$0xff] }
  0x4a   :  { %479 = vmatpush.bf16.msrb.mxu1 %v1670_v50  ;;  %v1704_v50 = vld [vmem:[#allocation6 + $0xd8] sm:$0xff] }
  0x4b   :  { %563 = vmatpush.bf16.msrb.mxu2 %v1678_v13  ;;  %v1721_v13 = vld [vmem:[#allocation6 + $0x160] sm:$0xff] }
  0x4c   :  { %648 = vmatpush.bf16.msrb.mxu3 %v1686_v30  ;;  %v1753_v30 = vld [vmem:[%s1928_s5 + $0x5] ss:$0 sm:$0xff] }
  0x4d   :  { %467 = vmatpush.bf16.msrb.mxu0 %v1661_v49  ;;  %v1705_v49 = vld [vmem:[#allocation6 + $0xe0] sm:$0xff] }
  0x4e   :  { %480 = vmatpush.bf16.msrb.mxu1 %v1669_v51  ;;  %v1703_v51 = vld [vmem:[#allocation6 + $0xd0] sm:$0xff] }
  0x4f   :  { %564 = vmatpush.bf16.msrb.mxu2 %v1677_v14  ;;  %v1720_v14 = vld [vmem:[#allocation6 + $0x158] sm:$0xff] }
  0x50   :  { %649 = vmatpush.bf16.msrb.mxu3 %v1685_v31 }
  0x51   :  { %727 = vmatpush.bf16.msra.mxu0 %v1700_v32 }
  0x52   :  { %812 = vmatpush.bf16.msra.mxu1 %v1708_v46 }
  0x55   :  { %728 = vmatpush.bf16.msra.mxu0 %v1699_v33 }
  0x56   :  { %813 = vmatpush.bf16.msra.mxu1 %v1707_v47 }
  0x59   :  { %729 = vmatpush.bf16.msra.mxu0 %v1698_v34 }
  0x5a   :  { %814 = vmatpush.bf16.msra.mxu1 %v1706_v48 }
  0x5d   :  { %730 = vmatpush.bf16.msra.mxu0 %v1697_v35 }
  0x5e   :  { %815 = vmatpush.bf16.msra.mxu1 %v1705_v49 }
  0x61   :  { %731 = vmatpush.bf16.msra.mxu0 %v1696_v36  ;;  %v1726_v36 = vld [vmem:[#allocation6 + $0x188] sm:$0xff] }
  0x62   :  { %816 = vmatpush.bf16.msra.mxu1 %v1704_v50  ;;  %v1734_v50 = vld [vmem:[#allocation6 + $0x1c8] sm:$0xff] }
  0x65   :  { %732 = vmatpush.bf16.msra.mxu0 %v1695_v37  ;;  %v1725_v37 = vld [vmem:[#allocation6 + $0x180] sm:$0xff] }
  0x66   :  { %817 = vmatpush.bf16.msra.mxu1 %v1703_v51  ;;  %v1733_v51 = vld [vmem:[#allocation6 + $0x1c0] sm:$0xff] }
  0x69   :  { %733 = vmatpush.bf16.msra.mxu0 %v1694_v44  ;;  %v1754_v44 = vld [vmem:[%s1928_s5 + $0x6] ss:$0 sm:$0xff] }
  0x6a   :  { %818 = vmatpush.bf16.msra.mxu1 %v1702_v58  ;;  %v1756_v58 = vld [vmem:[%s1928_s5 + $0x8] ss:$0 sm:$0xff] }
  0x6d   :  { %734 = vmatpush.bf16.msra.mxu0 %v1693_v45 }
  0xad   :  { %v281_v59 = vpop.f32.mrf.mxu0 }
  0xae   :  { %v282_v60 = vadd.f32 %v281_v59, %v108_v57  ;;  %v294_v61 = vpop.f32.mrf.mxu1  ;;  %v1701_v59 = vld [vmem:[#allocation6 + $0xc0] sm:$0xff] }
  0xaf   :  { %819 = vmatpush.bf16.msra.mxu1 %v1701_v59 }
  0xb0   :  { %v295_v62 = vadd.f32 %v294_v61, %v282_v60  ;;  %v1716_v60 = vld [vmem:[#allocation6 + $0x138] sm:$0xff]  ;;  %v1715_v61 = vld [vmem:[#allocation6 + $0x130] sm:$0xff] }
  0xb1   :  { %897 = vmatpush.bf16.msra.mxu2 %v1716_v60 }
  0xb2   :  { %v324_v0 = vmax.f32 %v295_v62, 0.0  ;;  %v1714_v62 = vld [vmem:[#allocation6 + $0x128] sm:$0xff] }
  0xb4   :  { %v326_v1 = vpack.c.bf16 %v324_v0, %v324_v0  ;;  %v1712_v0 = vld [vmem:[#allocation6 + $0x118] sm:$0xff] }
  0xb5   :  { %v307_v2 = vpop.f32.mrf.mxu2  ;;  %v283_v5 = vpop.f32.mrf.mxu0  ;;  %898 = vmatpush.bf16.msra.mxu2 %v1715_v61 }
  0xb6   :  { %v308_v3 = vadd.f32 %v307_v2, %v109_v63  ;;  %v320_v4 = vpop.f32.mrf.mxu3  ;;  %v296_v6 = vpop.f32.mrf.mxu1  ;;  %468 = vmatmul.bf16.vlgmr.msrb.gmra.mxu0 %v326_v1  ;;  %v1713_v63 = vld [vmem:[#allocation6 + $0x120] sm:$0xff]  ;;  %v1711_v1 = vld [vmem:[#allocation6 + $0x110] sm:$0xff] }
  0xb7   :  { %v1751_v2 = vld [vmem:[%s1928_s5 + $0x3] ss:$0 sm:$0xff] }
  0xb8   :  { %v321_v7 = vadd.f32 %v320_v4, %v308_v3 }
  0xb9   :  { %899 = vmatpush.bf16.msra.mxu2 %v1714_v62 }
  0xba   :  { %v325_v8 = vmax.f32 %v321_v7, 0.0 }
  0xbc   :  { %v327_v9 = vpack.c.bf16 %v325_v8, %v325_v8  ;;  %v1710_v8 = vld [vmem:[#allocation6 + $0x108] sm:$0xff] }
  0xbd   :  { %v309_v10 = vpop.f32.mrf.mxu2  ;;  %900 = vmatpush.bf16.msra.mxu2 %v1713_v63 }
  0xbe   :  { %v322_v11 = vpop.f32.mrf.mxu3  ;;  %481 = vmatmul.bf16.vlgmr.msrb.gmra.mxu1 %v327_v9  ;;  %v1709_v9 = vld [vmem:[#allocation6 + $0x100] sm:$0xff]  ;;  %v1724_v10 = vld [vmem:[#allocation6 + $0x178] sm:$0xff] }
  0xbf   :  { %982 = vmatpush.bf16.msra.mxu3 %v1724_v10  ;;  %v1723_v11 = vld [vmem:[#allocation6 + $0x170] sm:$0xff] }
  0xc1   :  { %901 = vmatpush.bf16.msra.mxu2 %v1712_v0 }
  0xc3   :  { %983 = vmatpush.bf16.msra.mxu3 %v1723_v11 }
  0xc5   :  { %902 = vmatpush.bf16.msra.mxu2 %v1711_v1 }
  0xc7   :  { %984 = vmatpush.bf16.msra.mxu3 %v1722_v12 }
  0xc9   :  { %903 = vmatpush.bf16.msra.mxu2 %v1710_v8 }
  0xcb   :  { %985 = vmatpush.bf16.msra.mxu3 %v1721_v13 }
  0xcd   :  { %904 = vmatpush.bf16.msra.mxu2 %v1709_v9 }
  0xcf   :  { %986 = vmatpush.bf16.msra.mxu3 %v1720_v14 }
  0xd3   :  { %987 = vmatpush.bf16.msra.mxu3 %v1719_v15 }
  0xd7   :  { %988 = vmatpush.bf16.msra.mxu3 %v1718_v22 }
 0x133   :  { %v469_v21 = vpop.f32.mrf.mxu0 }
 0x134   :  { %v470_v23 = vadd.f32 %v1748_v20, %v469_v21 }
 0x13b   :  { %v482_v24 = vpop.f32.mrf.mxu1  ;;  %v471_v26 = vpop.f32.mrf.mxu0 }
 0x13c   :  { %v483_v25 = vadd.f32 %v482_v24, %v470_v23  ;;  %v1717_v23 = vld [vmem:[#allocation6 + $0x140] sm:$0xff]  ;;  %v1732_v24 = vld [vmem:[#allocation6 + $0x1b8] sm:$0xff]  ;;  %v1730_v26 = vld [vmem:[#allocation6 + $0x1a8] sm:$0xff] }
 0x13d   :  { %989 = vmatpush.bf16.msra.mxu3 %v1717_v23  ;;  %1067 = vmatpush.bf16.msrb.mxu0 %v1732_v24 }
 0x13e   :  { %v486_v27 = vmax.f32 %v483_v25, 0.0  ;;  %v1731_v25 = vld [vmem:[#allocation6 + $0x1b0] sm:$0xff] }
 0x140   :  { %v487_v28 = vpack.c.bf16 %v486_v27, %v486_v27  ;;  %v1729_v27 = vld [vmem:[#allocation6 + $0x1a0] sm:$0xff] }
 0x141   :  { %1068 = vmatpush.bf16.msrb.mxu0 %v1731_v25 }
 0x142   :  { %565 = vmatmul.bf16.vlgmr.msrb.gmra.mxu2 %v487_v28  ;;  %v1728_v28 = vld [vmem:[#allocation6 + $0x198] sm:$0xff] }
 0x143   :  { %v484_v29 = vpop.f32.mrf.mxu1 }
 0x144   :  { %v1727_v29 = vld [vmem:[#allocation6 + $0x190] sm:$0xff] }
 0x145   :  { %1069 = vmatpush.bf16.msrb.mxu0 %v1730_v26 }
 0x149   :  { %1070 = vmatpush.bf16.msrb.mxu0 %v1729_v27 }
 0x14d   :  { %1071 = vmatpush.bf16.msrb.mxu0 %v1728_v28 }
 0x151   :  { %1072 = vmatpush.bf16.msrb.mxu0 %v1727_v29 }
 0x155   :  { %1073 = vmatpush.bf16.msrb.mxu0 %v1726_v36 }
 0x159   :  { %1074 = vmatpush.bf16.msrb.mxu0 %v1725_v37 }
 0x1c5   :  { %v566_v39 = vpop.f32.mrf.mxu2 }
 0x1c6   :  { %v567_v40 = vadd.f32 %v1749_v38, %v566_v39  ;;  %v1740_v38 = vld [vmem:[#allocation6 + $0x1f8] sm:$0xff]  ;;  %v1739_v39 = vld [vmem:[#allocation6 + $0x1f0] sm:$0xff] }
 0x1c7   :  { %1152 = vmatpush.bf16.msrb.mxu1 %v1740_v38 }
 0x1c8   :  { %v570_v41 = vmax.f32 %v567_v40, 0.0  ;;  %v1738_v40 = vld [vmem:[#allocation6 + $0x1e8] sm:$0xff] }
 0x1ca   :  { %v571_v42 = vpack.c.bf16 %v570_v41, %v570_v41  ;;  %v1737_v41 = vld [vmem:[#allocation6 + $0x1e0] sm:$0xff] }
 0x1cb   :  { %1153 = vmatpush.bf16.msrb.mxu1 %v1739_v39 }
 0x1cc   :  { %650 = vmatmul.bf16.vlgmr.msrb.gmra.mxu3 %v571_v42  ;;  %v1736_v42 = vld [vmem:[#allocation6 + $0x1d8] sm:$0xff] }
 0x1cd   :  { %v568_v43 = vpop.f32.mrf.mxu2 }
 0x1ce   :  { %v1735_v43 = vld [vmem:[#allocation6 + $0x1d0] sm:$0xff] }
 0x1cf   :  { %1154 = vmatpush.bf16.msrb.mxu1 %v1738_v40 }
 0x1d3   :  { %1155 = vmatpush.bf16.msrb.mxu1 %v1737_v41 }
 0x1d7   :  { %1156 = vmatpush.bf16.msrb.mxu1 %v1736_v42 }
 0x1db   :  { %1157 = vmatpush.bf16.msrb.mxu1 %v1735_v43 }
 0x1df   :  { %1158 = vmatpush.bf16.msrb.mxu1 %v1734_v50 }
 0x1e3   :  { %1159 = vmatpush.bf16.msrb.mxu1 %v1733_v51 }
 0x24f   :  { %v651_v53 = vpop.f32.mrf.mxu3 }
 0x250   :  { %v652_v54 = vadd.f32 %v1750_v52, %v651_v53  ;;  %v1755_v52 = vld [vmem:[%s1928_s5 + $0x7] ss:$0 sm:$0xff] }
 0x252   :  { %v655_v55 = vmax.f32 %v652_v54, 0.0 }
 0x254   :  { %v656_v56 = vpack.c.bf16 %v655_v55, %v655_v55 }
 0x256   :  { %735 = vmatmul.bf16.vlgmr.msra.gmra.mxu0 %v656_v56 }
 0x257   :  { %v653_v57 = vpop.f32.mrf.mxu3 }
 0x2d3   :  { %v736_v3 = vpop.f32.mrf.mxu0 }
 0x2d4   :  { %v737_v4 = vadd.f32 %v1751_v2, %v736_v3 }
 0x2d6   :  { %v740_v5 = vmax.f32 %v737_v4, 0.0 }
 0x2d8   :  { %v741_v6 = vpack.c.bf16 %v740_v5, %v740_v5 }
 0x2da   :  { %820 = vmatmul.bf16.vlgmr.msra.gmra.mxu1 %v741_v6 }
 0x2db   :  { %v738_v7 = vpop.f32.mrf.mxu0 }
 0x357   :  { %v821_v17 = vpop.f32.mrf.mxu1 }
 0x358   :  { %v822_v18 = vadd.f32 %v1752_v16, %v821_v17 }
 0x35a   :  { %v825_v19 = vmax.f32 %v822_v18, 0.0 }
 0x35c   :  { %v826_v20 = vpack.c.bf16 %v825_v19, %v825_v19 }
 0x35e   :  { %905 = vmatmul.bf16.vlgmr.msra.gmra.mxu2 %v826_v20 }
 0x35f   :  { %v823_v21 = vpop.f32.mrf.mxu1 }
 0x3e1   :  { %v906_v31 = vpop.f32.mrf.mxu2 }
 0x3e2   :  { %v907_v32 = vadd.f32 %v1753_v30, %v906_v31 }
 0x3e4   :  { %v910_v33 = vmax.f32 %v907_v32, 0.0 }
 0x3e6   :  { %v911_v34 = vpack.c.bf16 %v910_v33, %v910_v33 }
 0x3e8   :  { %990 = vmatmul.bf16.vlgmr.msra.gmra.mxu3 %v911_v34 }
 0x3e9   :  { %v908_v35 = vpop.f32.mrf.mxu2 }
 0x46b   :  { %v991_v45 = vpop.f32.mrf.mxu3 }
 0x46c   :  { %v992_v46 = vadd.f32 %v1754_v44, %v991_v45 }
 0x46e   :  { %v995_v47 = vmax.f32 %v992_v46, 0.0 }
 0x470   :  { %v996_v48 = vpack.c.bf16 %v995_v47, %v995_v47 }
 0x472   :  { %1075 = vmatmul.bf16.vlgmr.msrb.gmra.mxu0 %v996_v48 }
 0x473   :  { %v993_v49 = vpop.f32.mrf.mxu3 }
 0x4ef   :  { %v1076_v53 = vpop.f32.mrf.mxu0 }
 0x4f0   :  { %v1077_v54 = vadd.f32 %v1755_v52, %v1076_v53 }
 0x4f2   :  { %v1080_v55 = vmax.f32 %v1077_v54, 0.0 }
 0x4f4   :  { %v1081_v56 = vpack.c.bf16 %v1080_v55, %v1080_v55 }
 0x4f6   :  { %1160 = vmatmul.bf16.vlgmr.msrb.gmra.mxu1 %v1081_v56 }
 0x4f7   :  { %v1078_v57 = vpop.f32.mrf.mxu0 }
 0x573   :  { %v1161_v59 = vpop.f32.mrf.mxu1 }
 0x574   :  { %v1162_v60 = vadd.f32 %v1756_v58, %v1161_v59 }
 0x576   :  { %v1165_v61 = vmax.f32 %v1162_v60, 0.0 }
 0x578   :  { %1166 = vst [vmem:[%s1929_s6] sm:$0xff] %v1165_v61 }
 0x57b   :  { %v1163_v62 = vpop.f32.mrf.mxu1 }
 0x57c   :  { %1171 = vsyncpa [#allocation3], 1 }
 0x57d   :  { %1172 = vsyncpa [#allocation5], 1 }

</bundles_post_ra>
